<compile_context>
chip_gen: v7x
topology: tpu7x:2x2x1
jax: 0.10.0
libtpu: 0.0.40
codegen_flags: <defaults>
</compile_context>

<pallas_src>
import jax
import jax.numpy as jnp
from jax.experimental import pallas as pl
from jax.experimental.pallas import tpu as pltpu

LANE = 128          # lane width (last-dim alignment for padded weight/bias cols)
SUBLANE_BF16 = 16   # sublane alignment for bf16 tiles


def _round_up(x, m):
    return ((x + m - 1) // m) * m


def qnetwork_kernel(x_ref, w1_ref, b1_ref, w2_ref, b2_ref, w3_ref, b3_ref,
                    o_ref):
    # fc1 + ReLU  (dropout == identity in eval mode). bf16 operands, f32 accumulate.
    h = jnp.dot(x_ref[...], w1_ref[...], preferred_element_type=jnp.float32)
    h = jnp.maximum(h + b1_ref[...], 0.0)
    # fc2 + ReLU  (cast activation back to bf16 to feed the MXU in one pass)
    h = jnp.dot(h.astype(jnp.bfloat16), w2_ref[...],
                preferred_element_type=jnp.float32)
    h = jnp.maximum(h + b2_ref[...], 0.0)
    # fc3 (Q-values, no activation); bias folded into the lane-dense bf16 store.
    q = jnp.dot(h.astype(jnp.bfloat16), w3_ref[...],
                preferred_element_type=jnp.float32)
    o_ref[...] = (q + b3_ref[...]).astype(o_ref.dtype)


def _choose_tb(B):
    """Batch tile: big tiles to amortize per-grid-step overhead (~0.35us/step),
    but keep >= 2 grid steps for v7x's two TensorCores once the batch is large."""
    if B <= 1024:
        return _round_up(max(B, 1), SUBLANE_BF16)      # single tile, small batch
    if B <= 4096:
        return _round_up(pl.cdiv(B, 2), SUBLANE_BF16)  # exactly 2 grid steps
    return 2048                                         # many big steps


def qnetwork_forward(x, params):
    """x: (B, state_size) f32. params: bf16 weights + f32 biases (see init)."""
    w1, b1, w2, b2, w3, b3 = (params["w1"], params["b1"], params["w2"],
                              params["b2"], params["w3"], params["b3"])
    state_size = params["state_size"]
    action_size = params["action_size"]

    B = x.shape[0]
    H = w1.shape[1]         # hidden size (multiple of 128)
    Ap = w3.shape[1]        # padded action dim (multiple of 128)

    TB = _choose_tb(B)
    Bp = _round_up(B, TB)

    # Pad only the batch dim (zero rows are sliced off after the kernel); keep
    # the feature dim at state_size so we do not inflate x's HBM footprint.
    xp = jnp.zeros((Bp, state_size), jnp.bfloat16)
    xp = xp.at[:B, :].set(x.astype(jnp.bfloat16))

    grid = (Bp // TB,)
    out = pl.pallas_call(
        qnetwork_kernel,
        out_shape=jax.ShapeDtypeStruct((Bp, Ap), jnp.bfloat16),
        grid_spec=pltpu.PrefetchScalarGridSpec(
            num_scalar_prefetch=0,
            grid=grid,
            in_specs=[
                # x tile per batch block; last dim == full array dim (< 128 is OK)
                pl.BlockSpec((TB, state_size), lambda i: (i, 0)),
                # weights/biases: constant index_maps -> stay VMEM-resident
                pl.BlockSpec((state_size, H), lambda i: (0, 0)),
                pl.BlockSpec((1, H), lambda i: (0, 0)),
                pl.BlockSpec((H, H), lambda i: (0, 0)),
                pl.BlockSpec((1, H), lambda i: (0, 0)),
                pl.BlockSpec((H, Ap), lambda i: (0, 0)),
                pl.BlockSpec((1, Ap), lambda i: (0, 0)),
            ],
            out_specs=pl.BlockSpec((TB, Ap), lambda i: (i, 0)),
        ),
        compiler_params=pltpu.CompilerParams(
            dimension_semantics=("parallel",)),   # megacore sharding on v7x
    )(xp, w1, b1, w2, b2, w3, b3)

    # Strip batch / action padding and upcast Q-values to f32.
    return out[:B, :action_size].astype(jnp.float32)


def init_qnetwork_params(key, state_size, action_size, hidden_size=128):
    """PyTorch-default-style init (U[-1/sqrt(fan_in), +1/sqrt(fan_in)]).

    Weights are stored pre-transposed as (in, out) in bf16; w1 is kept unpadded
    (state_size, hidden); w3/b3 are zero-padded to a 128-lane action dim (the
    padding is sliced off after the kernel). Biases stay f32.
    """
    assert hidden_size % LANE == 0, "hidden_size must be a multiple of 128"

    def linear(k, fan_in, fan_out):
        kw, kb = jax.random.split(k)
        bound = 1.0 / float(fan_in) ** 0.5
        w = jax.random.uniform(kw, (fan_in, fan_out), jnp.float32, -bound, bound)
        b = jax.random.uniform(kb, (fan_out,), jnp.float32, -bound, bound)
        return w, b

    k1, k2, k3 = jax.random.split(key, 3)
    w1, b1 = linear(k1, state_size, hidden_size)
    w2, b2 = linear(k2, hidden_size, hidden_size)
    w3, b3 = linear(k3, hidden_size, action_size)

    Ap = _round_up(action_size, LANE)
    w3p = jnp.zeros((hidden_size, Ap), jnp.float32).at[:, :action_size].set(w3)
    b3p = jnp.zeros((1, Ap), jnp.float32).at[0, :action_size].set(b3)

    return {
        "w1": w1.astype(jnp.bfloat16),
        "b1": b1.reshape(1, hidden_size),
        "w2": w2.astype(jnp.bfloat16),
        "b2": b2.reshape(1, hidden_size),
        "w3": w3p.astype(jnp.bfloat16),
        "b3": b3p,
        "state_size": state_size,
        "action_size": action_size,
    }


if __name__ == "__main__":
    key = jax.random.PRNGKey(0)
    k_params, k_x = jax.random.split(key)

    batch = 2
    state_size = 8
    action_size = 4
    hidden_size = 128

    params = init_qnetwork_params(k_params, state_size, action_size, hidden_size)
    x = jax.random.normal(k_x, (batch, state_size), jnp.float32)

    q = qnetwork_forward(x, params)
    jax.block_until_ready(q)
    assert q.shape == (batch, action_size)

    # Pure-JAX reference with identical bf16 operand / output rounding
    # (eval-mode dropout == identity), f32 accumulation.
    xb = x.astype(jnp.bfloat16).astype(jnp.float32)
    w1f = params["w1"].astype(jnp.float32)
    w2f = params["w2"].astype(jnp.float32)
    w3f = params["w3"].astype(jnp.float32)
    h = jnp.maximum(xb @ w1f + params["b1"], 0.0)
    h = h.astype(jnp.bfloat16).astype(jnp.float32)
    h = jnp.maximum(h @ w2f + params["b2"], 0.0)
    h = h.astype(jnp.bfloat16).astype(jnp.float32)
    q_full = h @ w3f + params["b3"]
    q_ref = q_full[:, :action_size].astype(jnp.bfloat16).astype(jnp.float32)

    assert jnp.allclose(q, q_ref, atol=1e-2, rtol=1e-2), "mismatch vs reference"

    print("KERNEL_OK")
</pallas_src>

<mosaic_0001>
module attributes {stable_mosaic.version = 11 : i64} {
  func.func @qnetwork_kernel(%arg0: i32, %arg1: memref<16x8xbf16, #tpu.memory_space<vmem>>, %arg2: memref<8x128xbf16, #tpu.memory_space<vmem>>, %arg3: memref<1x128xf32, #tpu.memory_space<vmem>>, %arg4: memref<128x128xbf16, #tpu.memory_space<vmem>>, %arg5: memref<1x128xf32, #tpu.memory_space<vmem>>, %arg6: memref<128x128xbf16, #tpu.memory_space<vmem>>, %arg7: memref<1x128xf32, #tpu.memory_space<vmem>>, %arg8: memref<16x128xbf16, #tpu.memory_space<vmem>>) attributes {dimension_semantics = [#tpu.dimension_semantics<parallel>], iteration_bounds = array<i64: 1>, scalar_prefetch = 0 : i64, scratch_operands = 0 : i64, tpu.core_type = #tpu.core_type<tc>, window_params = [{transform_indices = @transform_0, window_bounds = array<i64: 16, 8>}, {pipeline_mode = #tpu.pipeline_mode<synchronous>, transform_indices = @transform_1, window_bounds = array<i64: 8, 128>}, {pipeline_mode = #tpu.pipeline_mode<synchronous>, transform_indices = @transform_2, window_bounds = array<i64: 1, 128>}, {pipeline_mode = #tpu.pipeline_mode<synchronous>, transform_indices = @transform_3, window_bounds = array<i64: 128, 128>}, {pipeline_mode = #tpu.pipeline_mode<synchronous>, transform_indices = @transform_4, window_bounds = array<i64: 1, 128>}, {pipeline_mode = #tpu.pipeline_mode<synchronous>, transform_indices = @transform_5, window_bounds = array<i64: 128, 128>}, {pipeline_mode = #tpu.pipeline_mode<synchronous>, transform_indices = @transform_6, window_bounds = array<i64: 1, 128>}, {transform_indices = @transform_7, window_bounds = array<i64: 16, 128>}]} {
    %c0 = arith.constant 0 : index
    %c0_0 = arith.constant 0 : index
    %0 = vector.load %arg1[%c0, %c0_0] : memref<16x8xbf16, #tpu.memory_space<vmem>>, vector<16x8xbf16>
    %c0_1 = arith.constant 0 : index
    %c0_2 = arith.constant 0 : index
    %1 = vector.load %arg2[%c0_1, %c0_2] : memref<8x128xbf16, #tpu.memory_space<vmem>>, vector<8x128xbf16>
    %cst = arith.constant dense<0.000000e+00> : vector<16x128xf32>
    %2 = tpu.matmul %0, %1, %cst {dimension_numbers = #tpu.dot_dimension_numbers<[1], [0], [0], [1], [0, 0, 1, 1], [], []>} : vector<16x8xbf16>, vector<8x128xbf16>, vector<16x128xf32> -> vector<16x128xf32>
    %c0_3 = arith.constant 0 : index
    %c0_4 = arith.constant 0 : index
    %3 = vector.load %arg3[%c0_3, %c0_4] : memref<1x128xf32, #tpu.memory_space<vmem>>, vector<1x128xf32>
    %4 = vector.broadcast %3 : vector<1x128xf32> to vector<16x128xf32>
    %5 = arith.addf %2, %4 : vector<16x128xf32>
    %cst_5 = arith.constant 0.000000e+00 : f32
    %6 = vector.broadcast %cst_5 : f32 to vector<16x128xf32>
    %7 = arith.maximumf %5, %6 : vector<16x128xf32>
    %8 = arith.truncf %7 : vector<16x128xf32> to vector<16x128xbf16>
    %c0_6 = arith.constant 0 : index
    %c0_7 = arith.constant 0 : index
    %9 = vector.load %arg4[%c0_6, %c0_7] : memref<128x128xbf16, #tpu.memory_space<vmem>>, vector<128x128xbf16>
    %cst_8 = arith.constant dense<0.000000e+00> : vector<16x128xf32>
    %10 = tpu.matmul %8, %9, %cst_8 {dimension_numbers = #tpu.dot_dimension_numbers<[1], [0], [0], [1], [0, 0, 1, 1], [], []>} : vector<16x128xbf16>, vector<128x128xbf16>, vector<16x128xf32> -> vector<16x128xf32>
    %c0_9 = arith.constant 0 : index
    %c0_10 = arith.constant 0 : index
    %11 = vector.load %arg5[%c0_9, %c0_10] : memref<1x128xf32, #tpu.memory_space<vmem>>, vector<1x128xf32>
    %12 = vector.broadcast %11 : vector<1x128xf32> to vector<16x128xf32>
    %13 = arith.addf %10, %12 : vector<16x128xf32>
    %cst_11 = arith.constant 0.000000e+00 : f32
    %14 = vector.broadcast %cst_11 : f32 to vector<16x128xf32>
    %15 = arith.maximumf %13, %14 : vector<16x128xf32>
    %16 = arith.truncf %15 : vector<16x128xf32> to vector<16x128xbf16>
    %c0_12 = arith.constant 0 : index
    %c0_13 = arith.constant 0 : index
    %17 = vector.load %arg6[%c0_12, %c0_13] : memref<128x128xbf16, #tpu.memory_space<vmem>>, vector<128x128xbf16>
    %cst_14 = arith.constant dense<0.000000e+00> : vector<16x128xf32>
    %18 = tpu.matmul %16, %17, %cst_14 {dimension_numbers = #tpu.dot_dimension_numbers<[1], [0], [0], [1], [0, 0, 1, 1], [], []>} : vector<16x128xbf16>, vector<128x128xbf16>, vector<16x128xf32> -> vector<16x128xf32>
    %c0_15 = arith.constant 0 : index
    %c0_16 = arith.constant 0 : index
    %19 = vector.load %arg7[%c0_15, %c0_16] : memref<1x128xf32, #tpu.memory_space<vmem>>, vector<1x128xf32>
    %20 = vector.broadcast %19 : vector<1x128xf32> to vector<16x128xf32>
    %21 = arith.addf %18, %20 : vector<16x128xf32>
    %22 = arith.truncf %21 : vector<16x128xf32> to vector<16x128xbf16>
    %c0_17 = arith.constant 0 : index
    %c0_18 = arith.constant 0 : index
    %23 = vector.load %arg8[%c0_17, %c0_18] : memref<16x128xbf16, #tpu.memory_space<vmem>>, vector<16x128xbf16>
    tpu.vector_store %arg8[%c0_17, %c0_18], %22 {strides = array<i32>} : memref<16x128xbf16, #tpu.memory_space<vmem>>, vector<16x128xbf16>,
    return
  }
  func.func @transform_0(%arg0: i32) -> (i32, i32) {
    %c0_i32 = arith.constant 0 : i32
    %c0_i32_0 = arith.constant 0 : i32
    return %arg0, %c0_i32 : i32, i32
  }
  func.func @transform_1(%arg0: i32) -> (i32, i32) {
    %c0_i32 = arith.constant 0 : i32
    %c0_i32_0 = arith.constant 0 : i32
    %c0_i32_1 = arith.constant 0 : i32
    return %c0_i32, %c0_i32_0 : i32, i32
  }
  func.func @transform_2(%arg0: i32) -> (i32, i32) {
    %c0_i32 = arith.constant 0 : i32
    %c0_i32_0 = arith.constant 0 : i32
    %c0_i32_1 = arith.constant 0 : i32
    return %c0_i32, %c0_i32_0 : i32, i32
  }
  func.func @transform_3(%arg0: i32) -> (i32, i32) {
    %c0_i32 = arith.constant 0 : i32
    %c0_i32_0 = arith.constant 0 : i32
    %c0_i32_1 = arith.constant 0 : i32
    return %c0_i32, %c0_i32_0 : i32, i32
  }
  func.func @transform_4(%arg0: i32) -> (i32, i32) {
    %c0_i32 = arith.constant 0 : i32
    %c0_i32_0 = arith.constant 0 : i32
    %c0_i32_1 = arith.constant 0 : i32
    return %c0_i32, %c0_i32_0 : i32, i32
  }
  func.func @transform_5(%arg0: i32) -> (i32, i32) {
    %c0_i32 = arith.constant 0 : i32
    %c0_i32_0 = arith.constant 0 : i32
    %c0_i32_1 = arith.constant 0 : i32
    return %c0_i32, %c0_i32_0 : i32, i32
  }
  func.func @transform_6(%arg0: i32) -> (i32, i32) {
    %c0_i32 = arith.constant 0 : i32
    %c0_i32_0 = arith.constant 0 : i32
    %c0_i32_1 = arith.constant 0 : i32
    return %c0_i32, %c0_i32_0 : i32, i32
  }
  func.func @transform_7(%arg0: i32) -> (i32, i32) {
    %c0_i32 = arith.constant 0 : i32
    %c0_i32_0 = arith.constant 0 : i32
    return %arg0, %c0_i32 : i32, i32
  }
}

</mosaic_0001>

<bundles_post_ra>
// kernel: tpu_custom_call.1
= control target key start
LH: loop header
LB: loop body
LE: loop exit
PB: predicated region body
PF: predicated region fallthrough
CT: control target
= control target key end

     0   :  { %12 = vsyncpa [#allocation3], 0  ;;  %s700_s0 = inlined_call_operand.vmem [shape: bf16[16,8], index: 0, kind: input, shape index: {}]   ;;  %s701_s1 = inlined_call_operand.vmem [shape: bf16[8,128], index: 1, kind: input, shape index: {}]   ;;  %s702_s2 = inlined_call_operand.vmem [shape: f32[1,128], index: 2, kind: input, shape index: {}]   ;;  %s703_s3 = inlined_call_operand.hbm [shape: bf16[128,128], index: 3, kind: input, shape index: {}]   ;;  %s704_s4 = inlined_call_operand.vmem [shape: f32[1,128], index: 4, kind: input, shape index: {}]   ;;  %s705_s5 = inlined_call_operand.hbm [shape: bf16[128,128], index: 5, kind: input, shape index: {}]   ;;  %s706_s6 = inlined_call_operand.vmem [shape: f32[1,128], index: 6, kind: input, shape index: {}]   ;;  %s707_s7 = inlined_call_operand.hbm [shape: bf16[16,128], index: 7, kind: output, shape index: {}]  }
   0x1   :  { %13 = vsyncpa [#allocation6], 0 }
   0x2   :  { %14 = vsyncpa [#allocation4], 0  ;;  %s570_s24 = smov [#allocation2]   ;;  %s498_s28 = scalar_lea.hbm %s703_s3, 1024 }
   0x3   :  { %s26_s25 = sshll.u32 %s570_s24, 4  ;;  %p499_p0 = scmp.ne.s32.totalorder %s703_s3, %s498_s28  ;;  %s27_s25 = int_to_ptr.vmem [resolvable:$true] %s26_s25 }
   0x4   :  { %p502_p1 = scmp.lt.u32.totalorder %s498_s28, %s703_s3 }
   0x6   :  { %p504_p2 = pnand %p502_p1, %p499_p0 }
   0x8   :  { %507 = shalt.err (!%p504_p2)
}
   0x9   :  { %s508_s10 = scalar_lea.vmem %s27_s25, 1024  ;;  %p513_p4 = scmp.lt.s32.totalorder %s27_s25, %s27_s25 }
   0xa   :  { %p509_p3 = scmp.ne.s32.totalorder %s27_s25, %s508_s10  ;;  %p514_p5 = scmp.lt.s32.totalorder %s508_s10, %s508_s10 }
   0xc   :  { %p515_p6 = por %p514_p5, %p513_p4 }
   0xe   :  { %p516_p7 = pnand %p515_p6, %p509_p3 }
  0x10   :  { %519 = shalt.err (!%p516_p7)
}
  0x11   :  { %s571_s11 = smov 64   ;;  %s572_s12 = smov 4  }
  0x12   :  { %32 = dma.hbm_to_vmem [thread:$0]  %s703_s3, 1024, %s27_s25, [#allocation3], %s571_s11, %s571_s11, %s572_s12  }
  0x13   :  { %s573_s15 = smov [#allocation5]   ;;  %s520_s19 = scalar_lea.hbm %s705_s5, 1024 }
  0x14   :  { %s40_s16 = sshll.u32 %s573_s15, 4  ;;  %p521_p8 = scmp.ne.s32.totalorder %s705_s5, %s520_s19  ;;  %s41_s16 = int_to_ptr.vmem [resolvable:$true] %s40_s16 }
  0x15   :  { %p524_p9 = scmp.lt.u32.totalorder %s520_s19, %s705_s5 }
  0x17   :  { %p526_p10 = pnand %p524_p9, %p521_p8 }
  0x19   :  { %529 = shalt.err (!%p526_p10)
}
  0x1a   :  { %s530_s24 = scalar_lea.vmem %s41_s16, 1024  ;;  %p535_p12 = scmp.lt.s32.totalorder %s41_s16, %s41_s16 }
  0x1b   :  { %p531_p11 = scmp.ne.s32.totalorder %s41_s16, %s530_s24  ;;  %p536_p13 = scmp.lt.s32.totalorder %s530_s24, %s530_s24 }
  0x1d   :  { %p537_p0 = por %p536_p13, %p535_p12 }
  0x1f   :  { %p538_p1 = pnand %p537_p0, %p531_p11 }
  0x21   :  { %541 = shalt.err (!%p538_p1)
}
  0x22   :  { %46 = dma.hbm_to_vmem [thread:$0]  %s705_s5, 1024, %s41_s16, [#allocation6], %s571_s11, %s571_s11, %s572_s12  }
  0x23   :  { %564 = dma.done.wait [#allocation3], 1024  }
  0x24   :  { %565 = vsyncadd [#allocation3], 4294966272 }
  0x25   :  { %566 = dma.done.wait [#allocation6], 1024  }
  0x26   :  { %567 = vsyncadd [#allocation6], 4294966272  ;;  %v574_v0 = vmov 0.0   ;;  %vm575_vm0 = vmmov 0   ;;  %vm75_vm1 = vcmask 1043456   ;;  %v481_v3 = vld [vmem:[%s700_s0] sm:$0xff]  }
  0x27   :  { %428 = vmatprep.subr.bf16.mxu0 %v574_v0  ;;  %430 = vmatprep.mubr.msk.bf16.mxu0 %vm575_vm0, %v574_v0  ;;  %v58_v1 = vld [vmem:[%s701_s1] sm:$0xf]  ;;  %vm71_vm2 = vcmask 64512   ;;  %v483_v5 = vld [vmem:[#allocation2 + $0x8] sm:$0xff]   ;;  %v484_v6 = vld [vmem:[#allocation2 + $0x10] sm:$0xff]   ;;  %s576_s9 = smov [#allocation7]  }
  0x28   :  { %434 = vmatprep.subr.bf16.mxu1 %v574_v0  ;;  %450 = vmatprep.mubr.msk.bf16.mxu1 %vm575_vm0, %v574_v0  ;;  %v77_v2 = vsel %vm75_vm1, %v58_v1, 0  ;;  %v482_v4 = vld [vmem:[#allocation2] sm:$0xff]   ;;  %v485_v7 = vld [vmem:[#allocation2 + $0x18] sm:$0xff]   ;;  %v487_v9 = vld [vmem:[#allocation2 + $0x28] sm:$0xff]   ;;  %s365_s10 = sshll.u32 %s576_s9, 4  ;;  %s366_s10 = int_to_ptr.vmem [resolvable:$true] %s365_s10 }
  0x29   :  { %429 = vmatpush3.bf16.msra.mxu0 %v77_v2  ;;  %435 = vmatpush3.bf16.msra.mxu1 %v482_v4  ;;  %v486_v8 = vld [vmem:[#allocation2 + $0x20] sm:$0xff]   ;;  %v488_v10 = vld [vmem:[#allocation2 + $0x30] sm:$0xff]   ;;  %v489_v11 = vld [vmem:[#allocation2 + $0x38] sm:$0xff]   ;;  %p547_p3 = scmp.lt.s32.totalorder %s366_s10, %s366_s10 }
  0x2a   :  { %454 = vmatprep.subr.bf16.mxu0 %v574_v0  ;;  %436 = vmatprep.subr.bf16.mxu1 %v574_v0  ;;  %v490_v12 = vld [vmem:[#allocation5] sm:$0xff]   ;;  %v491_v13 = vld [vmem:[#allocation5 + $0x8] sm:$0xff]   ;;  %v492_v14 = vld [vmem:[#allocation5 + $0x10] sm:$0xff]  }
  0x2b   :  { %v493_v15 = vld [vmem:[#allocation5 + $0x18] sm:$0xff]   ;;  %v494_v16 = vld [vmem:[#allocation5 + $0x20] sm:$0xff]   ;;  %v495_v17 = vld [vmem:[#allocation5 + $0x28] sm:$0xff]  }
  0x2c   :  { %431 = vmatmul.mubr.msk.bf16.vlgmr.msra.gmra.mrb[0].mxu0 %vm71_vm2, %v481_v3  ;;  %v378_v18 = vld [vmem:[%s702_s2] ss:$0 sm:$0xff]  ;;  %v496_v28 = vld [vmem:[#allocation5 + $0x30] sm:$0xff]   ;;  %v497_v29 = vld [vmem:[#allocation5 + $0x38] sm:$0xff]  }
  0x2d   :  { %470 = vmatprep.mubr.msk.bf16.mxu0 %vm575_vm0, %v574_v0  ;;  %437 = vmatpush3.bf16.msra.mxu1 %v483_v5  ;;  %v381_v30 = vld [vmem:[%s704_s4] ss:$0 sm:$0xff]  ;;  %s542_s4 = scalar_lea.vmem %s366_s10, 128 }
  0x2e   :  { %438 = vmatprep.subr.bf16.mxu1 %v574_v0  ;;  %455 = vmatpush3.bf16.msra.mxu0 %v490_v12  ;;  %v390_v40 = vld [vmem:[%s706_s6] ss:$0 sm:$0xff]  ;;  %p543_p2 = scmp.ne.s32.totalorder %s366_s10, %s542_s4  ;;  %p548_p4 = scmp.lt.s32.totalorder %s542_s4, %s542_s4 }
  0x2f   :  { %456 = vmatprep.subr.bf16.mxu0 %v574_v0 }
  0x30   :  { %p549_p5 = por %p548_p4, %p547_p3 }
  0x31   :  { %439 = vmatpush3.bf16.msra.mxu1 %v484_v6 }
  0x32   :  { %440 = vmatprep.subr.bf16.mxu1 %v574_v0  ;;  %457 = vmatpush3.bf16.msra.mxu0 %v491_v13  ;;  %p550_p6 = pnand %p549_p5, %p543_p2 }
  0x33   :  { %458 = vmatprep.subr.bf16.mxu0 %v574_v0 }
  0x35   :  { %441 = vmatpush3.bf16.msra.mxu1 %v485_v7 }
  0x36   :  { %442 = vmatprep.subr.bf16.mxu1 %v574_v0  ;;  %459 = vmatpush3.bf16.msra.mxu0 %v492_v14 }
  0x37   :  { %460 = vmatprep.subr.bf16.mxu0 %v574_v0 }
  0x39   :  { %443 = vmatpush3.bf16.msra.mxu1 %v486_v8 }
  0x3a   :  { %444 = vmatprep.subr.bf16.mxu1 %v574_v0  ;;  %461 = vmatpush3.bf16.msra.mxu0 %v493_v15 }
  0x3b   :  { %462 = vmatprep.subr.bf16.mxu0 %v574_v0 }
  0x3d   :  { %445 = vmatpush3.bf16.msra.mxu1 %v487_v9 }
  0x3e   :  { %446 = vmatprep.subr.bf16.mxu1 %v574_v0  ;;  %463 = vmatpush3.bf16.msra.mxu0 %v494_v16 }
  0x3f   :  { %464 = vmatprep.subr.bf16.mxu0 %v574_v0 }
  0x41   :  { %447 = vmatpush3.bf16.msra.mxu1 %v488_v10 }
  0x42   :  { %448 = vmatprep.subr.bf16.mxu1 %v574_v0  ;;  %465 = vmatpush3.bf16.msra.mxu0 %v495_v17 }
  0x43   :  { %466 = vmatprep.subr.bf16.mxu0 %v574_v0 }
  0x45   :  { %449 = vmatpush3.bf16.msra.mxu1 %v489_v11 }
  0x46   :  { %467 = vmatpush3.bf16.msra.mxu0 %v496_v28 }
  0x47   :  { %468 = vmatprep.subr.bf16.mxu0 %v574_v0 }
  0x4a   :  { %469 = vmatpush3.bf16.msra.mxu0 %v497_v29 }
  0xff   :  { %v113_v19 = vpop.f32.mrb[0].mxu0 }
 0x100   :  { %v114_v20 = vadd.f32 %v378_v18, %v113_v19  ;;  %v432_v21 = vpop.f32.mrb[1].mxu0 }
 0x101   :  { %v116_v22 = vpop.f32.mrb[2].mxu0 }
 0x102   :  { %v117_v23 = vadd.f32 %v378_v18, %v116_v22  ;;  %v433_v24 = vpop.f32.mrb[3].mxu0  ;;  %v120_v25 = vmax.f32 %v114_v20, 0.0 }
 0x104   :  { %v121_v26 = vmax.f32 %v117_v23, 0.0 }
 0x106   :  { %v122_v27 = vpack.c.bf16 %v121_v26, %v120_v25 }
 0x108   :  { %451 = vmatmul.mubr.bf16.vlgmr.msra.gmra.mrb[0].mxu1 %v122_v27 }
 0x1db   :  { %v228_v31 = vpop.f32.mrb[0].mxu1 }
 0x1dc   :  { %v229_v32 = vadd.f32 %v381_v30, %v228_v31  ;;  %v452_v33 = vpop.f32.mrb[1].mxu1 }
 0x1dd   :  { %v231_v34 = vpop.f32.mrb[2].mxu1 }
 0x1de   :  { %v232_v35 = vadd.f32 %v381_v30, %v231_v34  ;;  %v453_v36 = vpop.f32.mrb[3].mxu1  ;;  %v235_v37 = vmax.f32 %v229_v32, 0.0 }
 0x1e0   :  { %v236_v38 = vmax.f32 %v232_v35, 0.0 }
 0x1e2   :  { %v237_v39 = vpack.c.bf16 %v236_v38, %v235_v37 }
 0x1e4   :  { %471 = vmatmul.mubr.bf16.vlgmr.msra.gmra.mrb[4].mxu0 %v237_v39 }
 0x2b7   :  { %v343_v41 = vpop.f32.mrb[4].mxu0 }
 0x2b8   :  { %v472_v42 = vpop.f32.mrb[5].mxu0  ;;  %v344_v44 = vadd.f32 %v390_v40, %v343_v41 }
 0x2b9   :  { %v346_v43 = vpop.f32.mrb[6].mxu0 }
 0x2ba   :  { %v347_v45 = vadd.f32 %v390_v40, %v346_v43  ;;  %v473_v46 = vpop.f32.mrb[7].mxu0 }
 0x2bc   :  { %v406_v47 = vpack.c.bf16 %v347_v45, %v344_v44 }
 0x2be   :  { %407 = vst [vmem:[#allocation7] sm:$0xff] %v406_v47  }
 0x2bf   :  { %553 = shalt.err (!%p550_p6)
}
 0x2c0   :  { %s554_s14 = scalar_lea.hbm %s707_s7, 128 }
 0x2c1   :  { %p555_p7 = scmp.ne.s32.totalorder %s707_s7, %s554_s14  ;;  %p558_p8 = scmp.lt.u32.totalorder %s554_s14, %s707_s7 }
 0x2c3   :  { %p560_p9 = pnand %p558_p8, %p555_p7 }
 0x2c5   :  { %563 = shalt.err (!%p560_p9)
}
 0x2c6   :  { %371 = dma.vmem_to_hbm [thread:$0]  %s366_s10, 128, %s707_s7, [#allocation4], %s571_s11, %s571_s11, %s572_s12  }
 0x2c7   :  { %568 = dma.done.wait [#allocation4], 128  }
 0x2c8   :  { %569 = vsyncadd [#allocation4], 4294967168 }
 0x2c9   :  { %375 = vsyncpa [#allocation3], 1 }
 0x2ca   :  { %376 = vsyncpa [#allocation6], 1 }
 0x2cb   :  { %377 = vsyncpa [#allocation4], 1 }

</bundles_post_ra>
